<compile_context>
chip_gen: v6e
topology: v6e:2x2x1
jax: 0.10.0
libtpu: 0.0.40
codegen_flags: <defaults>
</compile_context>

<pallas_src>
import functools

import jax
import jax.numpy as jnp
from jax import lax
from jax.experimental import pallas as pl
from jax.experimental.pallas import tpu as pltpu


# -----------------------------------------------------------------------------
# Kernel 1 (fused): inner GD fit + final MSE + analytic hessianyy
# -----------------------------------------------------------------------------
def _fit_hess_kernel(wt_ref, b_ref, y_ref, x_ref, mods_ref, mse_ref, hyy_ref,
                     *, inner_steps, inner_lr):
    Wt = wt_ref[...]                    # (M, P)  lane-dense (P on lanes)
    b = b_ref[...]                      # (1, P)  INR bias
    y = y_ref[...]                      # (1, P)  fit target (first image, ch 0)
    x = x_ref[...]                      # (1, P)  flattened input
    M, P = Wt.shape
    scale = 2.0 / P

    # Curvature matrix == hessianyy, computed ONCE (W hoisted out of the loop).
    G = scale * lax.dot_general(Wt, Wt, (((1,), (1,)), ((), ())),
                                preferred_element_type=jnp.float32)     # (M, M)
    c = scale * lax.dot_general(b - y, Wt, (((1,), (1,)), ((), ())),
                                preferred_element_type=jnp.float32)     # (1, M)

    # TODO(synk): LBFGS + strong-Wolfe line search has no Pallas equivalent;
    # fixed-step GD on the same convex quadratic (same fixed point) is used.
    def step(_, m):
        g = jnp.dot(m, G, preferred_element_type=jnp.float32) + c       # (1, M)
        return m - inner_lr * g

    m = lax.fori_loop(0, inner_steps, step, jnp.zeros((1, M), jnp.float32),
                      unroll=True)
    mods_ref[...] = m

    # Final MSE of inr(mods) against x.flatten()
    fitted = jnp.dot(m, Wt, preferred_element_type=jnp.float32) + b     # (1, P)
    r = fitted - x
    mse_ref[...] = jnp.sum(r * r, axis=(0, 1), keepdims=True) / P       # (1, 1)

    hyy_ref[...] = G                                                    # (M, M)


def make_fit_hess_call(P, M, inner_steps, inner_lr):
    kernel = functools.partial(_fit_hess_kernel, inner_steps=inner_steps,
                               inner_lr=float(inner_lr))
    vmem = pl.BlockSpec(memory_space=pltpu.MemorySpace.VMEM)
    return pl.pallas_call(
        kernel,
        out_shape=(
            jax.ShapeDtypeStruct((1, M), jnp.float32),   # mods
            jax.ShapeDtypeStruct((1, 1), jnp.float32),   # mse
            jax.ShapeDtypeStruct((M, M), jnp.float32),   # hessianyy
        ),
        in_specs=[vmem, vmem, vmem, vmem],
        out_specs=(vmem, vmem, vmem),
    )


# -----------------------------------------------------------------------------
# Kernel 2: prod = (-hessianyx^T @ Hinv)^T = -(Hinv^T @ hessianyx)
#                = (2/P) * Hinv^T @ Wt          (hessianyx never materialized)
# -----------------------------------------------------------------------------
def _prod_kernel(hinv_ref, wt_ref, prod_ref):
    P = wt_ref.shape[1]
    prod_ref[...] = (2.0 / P) * lax.dot_general(
        hinv_ref[...], wt_ref[...], (((0,), (0,)), ((), ())),
        preferred_element_type=jnp.float32)                             # (M, P)


def make_prod_call(P, M):
    vmem = pl.BlockSpec(memory_space=pltpu.MemorySpace.VMEM)
    return pl.pallas_call(
        _prod_kernel,
        out_shape=jax.ShapeDtypeStruct((M, P), jnp.float32),
        in_specs=[vmem, vmem],
        out_specs=vmem,
    )


# -----------------------------------------------------------------------------
# Wrapper reproducing ArgminLayer.forward
# -----------------------------------------------------------------------------
def argmin_layer_forward(x, Wt, b, *, inner_steps, inner_lr,
                         return_mse=False, clean=False):
    """x: (B, C, H, W) NCHW with B*C*H*W == P (the reference implies B=C=1).
    Wt: (M, P) transposed INR weight, b: (1, P) INR bias."""
    M, P = Wt.shape

    fit_hess = make_fit_hess_call(P, M, inner_steps, inner_lr)
    prod_call = make_prod_call(P, M)

    # The reference fits every image, flips, and keeps index 0 == FIRST image;
    # the discarded fits are dead compute, so only the first image is fitted.
    y = x[0, 0].reshape(1, -1).astype(jnp.float32)        # (1, P)
    x_flat = x.reshape(1, -1).astype(jnp.float32)         # (1, P)  (B=C=1)

    mods, mse, hyy = fit_hess(Wt, b, y, x_flat)

    if clean:
        prod = None
    else:
        # TODO(synk): matrix inverse has no clean Pallas primitive; the tiny
        # (M, M) inverse stays in JAX glue (matches the reference's .inverse()).
        hinv = jnp.linalg.inv(hyy)
        prod = prod_call(hinv, Wt)

    mods_vec = mods[0]                                    # (M,), like mods[0]
    if return_mse:
        return (mods_vec, mse[0, 0]), prod
    return mods_vec, prod


# -----------------------------------------------------------------------------
if __name__ == "__main__":
    # Shapes implied by the forward: the final mse compares inr(mods) (P elems)
    # against x.flatten(), so B*C*H*W must equal P -> B = C = 1.
    B, C, H, Wd = 1, 1, 16, 16
    P = H * Wd            # 256 pixels (lane-dense: 2 x 128)
    M = 32                # modul_features
    inner_steps = 20
    inner_lr = 1.0

    key = jax.random.PRNGKey(0)
    kx, kw, kb = jax.random.split(key, 3)
    x = jax.random.normal(kx, (B, C, H, Wd), dtype=jnp.float32)
    Wt = 0.05 * jax.random.normal(kw, (M, P), dtype=jnp.float32)   # INR weight^T
    b = 0.01 * jax.random.normal(kb, (1, P), dtype=jnp.float32)    # INR bias

    (mods, mse), prod = argmin_layer_forward(
        x, Wt, b, inner_steps=inner_steps, inner_lr=inner_lr, return_mse=True)

    jax.block_until_ready((mods, mse, prod))
    assert mods.shape == (M,)
    assert mse.shape == ()
    assert prod.shape == (M, P)
    print("KERNEL_OK")
</pallas_src>

<mosaic_0001>
module attributes {stable_mosaic.version = 11 : i64} {
  func.func @_fit_hess_kernel(%arg0: memref<32x256xf32, #tpu.memory_space<vmem>>, %arg1: memref<1x256xf32, #tpu.memory_space<vmem>>, %arg2: memref<1x256xf32, #tpu.memory_space<vmem>>, %arg3: memref<1x256xf32, #tpu.memory_space<vmem>>, %arg4: memref<1x32xf32, #tpu.memory_space<vmem>>, %arg5: memref<1x1xf32, #tpu.memory_space<vmem>>, %arg6: memref<32x32xf32, #tpu.memory_space<vmem>>) attributes {dimension_semantics = [], scalar_prefetch = 0 : i64, scratch_operands = 0 : i64, tpu.core_type = #tpu.core_type<tc>} {
    %c0 = arith.constant 0 : index
    %c0_0 = arith.constant 0 : index
    %0 = vector.load %arg0[%c0, %c0_0] : memref<32x256xf32, #tpu.memory_space<vmem>>, vector<32x256xf32>
    %c0_1 = arith.constant 0 : index
    %c0_2 = arith.constant 0 : index
    %1 = vector.load %arg1[%c0_1, %c0_2] : memref<1x256xf32, #tpu.memory_space<vmem>>, vector<1x256xf32>
    %c0_3 = arith.constant 0 : index
    %c0_4 = arith.constant 0 : index
    %2 = vector.load %arg2[%c0_3, %c0_4] : memref<1x256xf32, #tpu.memory_space<vmem>>, vector<1x256xf32>
    %c0_5 = arith.constant 0 : index
    %c0_6 = arith.constant 0 : index
    %3 = vector.load %arg3[%c0_5, %c0_6] : memref<1x256xf32, #tpu.memory_space<vmem>>, vector<1x256xf32>
    %cst = arith.constant dense<0.000000e+00> : vector<32x32xf32>
    %4 = tpu.matmul %0, %0, %cst {dimension_numbers = #tpu.dot_dimension_numbers<[1], [1], [0], [0], [0, 0, 1, 0], [], []>} : vector<32x256xf32>, vector<32x256xf32>, vector<32x32xf32> -> vector<32x32xf32>
    %cst_7 = arith.constant 7.812500e-03 : f32
    %5 = vector.broadcast %cst_7 : f32 to vector<32x32xf32>
    %6 = arith.mulf %5, %4 : vector<32x32xf32>
    %7 = arith.subf %1, %2 : vector<1x256xf32>
    %cst_8 = arith.constant dense<0.000000e+00> : vector<1x32xf32>
    %8 = tpu.matmul %7, %0, %cst_8 {dimension_numbers = #tpu.dot_dimension_numbers<[1], [1], [0], [0], [0, 0, 1, 0], [], []>} : vector<1x256xf32>, vector<32x256xf32>, vector<1x32xf32> -> vector<1x32xf32>
    %cst_9 = arith.constant 7.812500e-03 : f32
    %9 = vector.broadcast %cst_9 : f32 to vector<1x32xf32>
    %10 = arith.mulf %9, %8 : vector<1x32xf32>
    %cst_10 = arith.constant 0.000000e+00 : f32
    %11 = vector.broadcast %cst_10 : f32 to vector<1x32xf32>
    %c0_i32 = arith.constant 0 : i32
    %cst_11 = arith.constant dense<0.000000e+00> : vector<1x32xf32>
    %12 = tpu.matmul %11, %6, %cst_11 {dimension_numbers = #tpu.dot_dimension_numbers<[1], [0], [0], [1], [0, 0, 1, 1], [], []>} : vector<1x32xf32>, vector<32x32xf32>, vector<1x32xf32> -> vector<1x32xf32>
    %13 = arith.addf %12, %10 : vector<1x32xf32>
    %cst_12 = arith.constant 1.000000e+00 : f32
    %14 = vector.broadcast %cst_12 : f32 to vector<1x32xf32>
    %15 = arith.mulf %14, %13 : vector<1x32xf32>
    %16 = arith.subf %11, %15 : vector<1x32xf32>
    %c1_i32 = arith.constant 1 : i32
    %cst_13 = arith.constant dense<0.000000e+00> : vector<1x32xf32>
    %17 = tpu.matmul %16, %6, %cst_13 {dimension_numbers = #tpu.dot_dimension_numbers<[1], [0], [0], [1], [0, 0, 1, 1], [], []>} : vector<1x32xf32>, vector<32x32xf32>, vector<1x32xf32> -> vector<1x32xf32>
    %18 = arith.addf %17, %10 : vector<1x32xf32>
    %cst_14 = arith.constant 1.000000e+00 : f32
    %19 = vector.broadcast %cst_14 : f32 to vector<1x32xf32>
    %20 = arith.mulf %19, %18 : vector<1x32xf32>
    %21 = arith.subf %16, %20 : vector<1x32xf32>
    %c2_i32 = arith.constant 2 : i32
    %cst_15 = arith.constant dense<0.000000e+00> : vector<1x32xf32>
    %22 = tpu.matmul %21, %6, %cst_15 {dimension_numbers = #tpu.dot_dimension_numbers<[1], [0], [0], [1], [0, 0, 1, 1], [], []>} : vector<1x32xf32>, vector<32x32xf32>, vector<1x32xf32> -> vector<1x32xf32>
    %23 = arith.addf %22, %10 : vector<1x32xf32>
    %cst_16 = arith.constant 1.000000e+00 : f32
    %24 = vector.broadcast %cst_16 : f32 to vector<1x32xf32>
    %25 = arith.mulf %24, %23 : vector<1x32xf32>
    %26 = arith.subf %21, %25 : vector<1x32xf32>
    %c3_i32 = arith.constant 3 : i32
    %cst_17 = arith.constant dense<0.000000e+00> : vector<1x32xf32>
    %27 = tpu.matmul %26, %6, %cst_17 {dimension_numbers = #tpu.dot_dimension_numbers<[1], [0], [0], [1], [0, 0, 1, 1], [], []>} : vector<1x32xf32>, vector<32x32xf32>, vector<1x32xf32> -> vector<1x32xf32>
    %28 = arith.addf %27, %10 : vector<1x32xf32>
    %cst_18 = arith.constant 1.000000e+00 : f32
    %29 = vector.broadcast %cst_18 : f32 to vector<1x32xf32>
    %30 = arith.mulf %29, %28 : vector<1x32xf32>
    %31 = arith.subf %26, %30 : vector<1x32xf32>
    %c4_i32 = arith.constant 4 : i32
    %cst_19 = arith.constant dense<0.000000e+00> : vector<1x32xf32>
    %32 = tpu.matmul %31, %6, %cst_19 {dimension_numbers = #tpu.dot_dimension_numbers<[1], [0], [0], [1], [0, 0, 1, 1], [], []>} : vector<1x32xf32>, vector<32x32xf32>, vector<1x32xf32> -> vector<1x32xf32>
    %33 = arith.addf %32, %10 : vector<1x32xf32>
    %cst_20 = arith.constant 1.000000e+00 : f32
    %34 = vector.broadcast %cst_20 : f32 to vector<1x32xf32>
    %35 = arith.mulf %34, %33 : vector<1x32xf32>
    %36 = arith.subf %31, %35 : vector<1x32xf32>
    %c5_i32 = arith.constant 5 : i32
    %cst_21 = arith.constant dense<0.000000e+00> : vector<1x32xf32>
    %37 = tpu.matmul %36, %6, %cst_21 {dimension_numbers = #tpu.dot_dimension_numbers<[1], [0], [0], [1], [0, 0, 1, 1], [], []>} : vector<1x32xf32>, vector<32x32xf32>, vector<1x32xf32> -> vector<1x32xf32>
    %38 = arith.addf %37, %10 : vector<1x32xf32>
    %cst_22 = arith.constant 1.000000e+00 : f32
    %39 = vector.broadcast %cst_22 : f32 to vector<1x32xf32>
    %40 = arith.mulf %39, %38 : vector<1x32xf32>
    %41 = arith.subf %36, %40 : vector<1x32xf32>
    %c6_i32 = arith.constant 6 : i32
    %cst_23 = arith.constant dense<0.000000e+00> : vector<1x32xf32>
    %42 = tpu.matmul %41, %6, %cst_23 {dimension_numbers = #tpu.dot_dimension_numbers<[1], [0], [0], [1], [0, 0, 1, 1], [], []>} : vector<1x32xf32>, vector<32x32xf32>, vector<1x32xf32> -> vector<1x32xf32>
    %43 = arith.addf %42, %10 : vector<1x32xf32>
    %cst_24 = arith.constant 1.000000e+00 : f32
    %44 = vector.broadcast %cst_24 : f32 to vector<1x32xf32>
    %45 = arith.mulf %44, %43 : vector<1x32xf32>
    %46 = arith.subf %41, %45 : vector<1x32xf32>
    %c7_i32 = arith.constant 7 : i32
    %cst_25 = arith.constant dense<0.000000e+00> : vector<1x32xf32>
    %47 = tpu.matmul %46, %6, %cst_25 {dimension_numbers = #tpu.dot_dimension_numbers<[1], [0], [0], [1], [0, 0, 1, 1], [], []>} : vector<1x32xf32>, vector<32x32xf32>, vector<1x32xf32> -> vector<1x32xf32>
    %48 = arith.addf %47, %10 : vector<1x32xf32>
    %cst_26 = arith.constant 1.000000e+00 : f32
    %49 = vector.broadcast %cst_26 : f32 to vector<1x32xf32>
    %50 = arith.mulf %49, %48 : vector<1x32xf32>
    %51 = arith.subf %46, %50 : vector<1x32xf32>
    %c8_i32 = arith.constant 8 : i32
    %cst_27 = arith.constant dense<0.000000e+00> : vector<1x32xf32>
    %52 = tpu.matmul %51, %6, %cst_27 {dimension_numbers = #tpu.dot_dimension_numbers<[1], [0], [0], [1], [0, 0, 1, 1], [], []>} : vector<1x32xf32>, vector<32x32xf32>, vector<1x32xf32> -> vector<1x32xf32>
    %53 = arith.addf %52, %10 : vector<1x32xf32>
    %cst_28 = arith.constant 1.000000e+00 : f32
    %54 = vector.broadcast %cst_28 : f32 to vector<1x32xf32>
    %55 = arith.mulf %54, %53 : vector<1x32xf32>
    %56 = arith.subf %51, %55 : vector<1x32xf32>
    %c9_i32 = arith.constant 9 : i32
    %cst_29 = arith.constant dense<0.000000e+00> : vector<1x32xf32>
    %57 = tpu.matmul %56, %6, %cst_29 {dimension_numbers = #tpu.dot_dimension_numbers<[1], [0], [0], [1], [0, 0, 1, 1], [], []>} : vector<1x32xf32>, vector<32x32xf32>, vector<1x32xf32> -> vector<1x32xf32>
    %58 = arith.addf %57, %10 : vector<1x32xf32>
    %cst_30 = arith.constant 1.000000e+00 : f32
    %59 = vector.broadcast %cst_30 : f32 to vector<1x32xf32>
    %60 = arith.mulf %59, %58 : vector<1x32xf32>
    %61 = arith.subf %56, %60 : vector<1x32xf32>
    %c10_i32 = arith.constant 10 : i32
    %cst_31 = arith.constant dense<0.000000e+00> : vector<1x32xf32>
    %62 = tpu.matmul %61, %6, %cst_31 {dimension_numbers = #tpu.dot_dimension_numbers<[1], [0], [0], [1], [0, 0, 1, 1], [], []>} : vector<1x32xf32>, vector<32x32xf32>, vector<1x32xf32> -> vector<1x32xf32>
    %63 = arith.addf %62, %10 : vector<1x32xf32>
    %cst_32 = arith.constant 1.000000e+00 : f32
    %64 = vector.broadcast %cst_32 : f32 to vector<1x32xf32>
    %65 = arith.mulf %64, %63 : vector<1x32xf32>
    %66 = arith.subf %61, %65 : vector<1x32xf32>
    %c11_i32 = arith.constant 11 : i32
    %cst_33 = arith.constant dense<0.000000e+00> : vector<1x32xf32>
    %67 = tpu.matmul %66, %6, %cst_33 {dimension_numbers = #tpu.dot_dimension_numbers<[1], [0], [0], [1], [0, 0, 1, 1], [], []>} : vector<1x32xf32>, vector<32x32xf32>, vector<1x32xf32> -> vector<1x32xf32>
    %68 = arith.addf %67, %10 : vector<1x32xf32>
    %cst_34 = arith.constant 1.000000e+00 : f32
    %69 = vector.broadcast %cst_34 : f32 to vector<1x32xf32>
    %70 = arith.mulf %69, %68 : vector<1x32xf32>
    %71 = arith.subf %66, %70 : vector<1x32xf32>
    %c12_i32 = arith.constant 12 : i32
    %cst_35 = arith.constant dense<0.000000e+00> : vector<1x32xf32>
    %72 = tpu.matmul %71, %6, %cst_35 {dimension_numbers = #tpu.dot_dimension_numbers<[1], [0], [0], [1], [0, 0, 1, 1], [], []>} : vector<1x32xf32>, vector<32x32xf32>, vector<1x32xf32> -> vector<1x32xf32>
    %73 = arith.addf %72, %10 : vector<1x32xf32>
    %cst_36 = arith.constant 1.000000e+00 : f32
    %74 = vector.broadcast %cst_36 : f32 to vector<1x32xf32>
    %75 = arith.mulf %74, %73 : vector<1x32xf32>
    %76 = arith.subf %71, %75 : vector<1x32xf32>
    %c13_i32 = arith.constant 13 : i32
    %cst_37 = arith.constant dense<0.000000e+00> : vector<1x32xf32>
    %77 = tpu.matmul %76, %6, %cst_37 {dimension_numbers = #tpu.dot_dimension_numbers<[1], [0], [0], [1], [0, 0, 1, 1], [], []>} : vector<1x32xf32>, vector<32x32xf32>, vector<1x32xf32> -> vector<1x32xf32>
    %78 = arith.addf %77, %10 : vector<1x32xf32>
    %cst_38 = arith.constant 1.000000e+00 : f32
    %79 = vector.broadcast %cst_38 : f32 to vector<1x32xf32>
    %80 = arith.mulf %79, %78 : vector<1x32xf32>
    %81 = arith.subf %76, %80 : vector<1x32xf32>
    %c14_i32 = arith.constant 14 : i32
    %cst_39 = arith.constant dense<0.000000e+00> : vector<1x32xf32>
    %82 = tpu.matmul %81, %6, %cst_39 {dimension_numbers = #tpu.dot_dimension_numbers<[1], [0], [0], [1], [0, 0, 1, 1], [], []>} : vector<1x32xf32>, vector<32x32xf32>, vector<1x32xf32> -> vector<1x32xf32>
    %83 = arith.addf %82, %10 : vector<1x32xf32>
    %cst_40 = arith.constant 1.000000e+00 : f32
    %84 = vector.broadcast %cst_40 : f32 to vector<1x32xf32>
    %85 = arith.mulf %84, %83 : vector<1x32xf32>
    %86 = arith.subf %81, %85 : vector<1x32xf32>
    %c15_i32 = arith.constant 15 : i32
    %cst_41 = arith.constant dense<0.000000e+00> : vector<1x32xf32>
    %87 = tpu.matmul %86, %6, %cst_41 {dimension_numbers = #tpu.dot_dimension_numbers<[1], [0], [0], [1], [0, 0, 1, 1], [], []>} : vector<1x32xf32>, vector<32x32xf32>, vector<1x32xf32> -> vector<1x32xf32>
    %88 = arith.addf %87, %10 : vector<1x32xf32>
    %cst_42 = arith.constant 1.000000e+00 : f32
    %89 = vector.broadcast %cst_42 : f32 to vector<1x32xf32>
    %90 = arith.mulf %89, %88 : vector<1x32xf32>
    %91 = arith.subf %86, %90 : vector<1x32xf32>
    %c16_i32 = arith.constant 16 : i32
    %cst_43 = arith.constant dense<0.000000e+00> : vector<1x32xf32>
    %92 = tpu.matmul %91, %6, %cst_43 {dimension_numbers = #tpu.dot_dimension_numbers<[1], [0], [0], [1], [0, 0, 1, 1], [], []>} : vector<1x32xf32>, vector<32x32xf32>, vector<1x32xf32> -> vector<1x32xf32>
    %93 = arith.addf %92, %10 : vector<1x32xf32>
    %cst_44 = arith.constant 1.000000e+00 : f32
    %94 = vector.broadcast %cst_44 : f32 to vector<1x32xf32>
    %95 = arith.mulf %94, %93 : vector<1x32xf32>
    %96 = arith.subf %91, %95 : vector<1x32xf32>
    %c17_i32 = arith.constant 17 : i32
    %cst_45 = arith.constant dense<0.000000e+00> : vector<1x32xf32>
    %97 = tpu.matmul %96, %6, %cst_45 {dimension_numbers = #tpu.dot_dimension_numbers<[1], [0], [0], [1], [0, 0, 1, 1], [], []>} : vector<1x32xf32>, vector<32x32xf32>, vector<1x32xf32> -> vector<1x32xf32>
    %98 = arith.addf %97, %10 : vector<1x32xf32>
    %cst_46 = arith.constant 1.000000e+00 : f32
    %99 = vector.broadcast %cst_46 : f32 to vector<1x32xf32>
    %100 = arith.mulf %99, %98 : vector<1x32xf32>
    %101 = arith.subf %96, %100 : vector<1x32xf32>
    %c18_i32 = arith.constant 18 : i32
    %cst_47 = arith.constant dense<0.000000e+00> : vector<1x32xf32>
    %102 = tpu.matmul %101, %6, %cst_47 {dimension_numbers = #tpu.dot_dimension_numbers<[1], [0], [0], [1], [0, 0, 1, 1], [], []>} : vector<1x32xf32>, vector<32x32xf32>, vector<1x32xf32> -> vector<1x32xf32>
    %103 = arith.addf %102, %10 : vector<1x32xf32>
    %cst_48 = arith.constant 1.000000e+00 : f32
    %104 = vector.broadcast %cst_48 : f32 to vector<1x32xf32>
    %105 = arith.mulf %104, %103 : vector<1x32xf32>
    %106 = arith.subf %101, %105 : vector<1x32xf32>
    %c19_i32 = arith.constant 19 : i32
    %cst_49 = arith.constant dense<0.000000e+00> : vector<1x32xf32>
    %107 = tpu.matmul %106, %6, %cst_49 {dimension_numbers = #tpu.dot_dimension_numbers<[1], [0], [0], [1], [0, 0, 1, 1], [], []>} : vector<1x32xf32>, vector<32x32xf32>, vector<1x32xf32> -> vector<1x32xf32>
    %108 = arith.addf %107, %10 : vector<1x32xf32>
    %cst_50 = arith.constant 1.000000e+00 : f32
    %109 = vector.broadcast %cst_50 : f32 to vector<1x32xf32>
    %110 = arith.mulf %109, %108 : vector<1x32xf32>
    %111 = arith.subf %106, %110 : vector<1x32xf32>
    %c0_51 = arith.constant 0 : index
    %c0_52 = arith.constant 0 : index
    %112 = vector.load %arg4[%c0_51, %c0_52] : memref<1x32xf32, #tpu.memory_space<vmem>>, vector<1x32xf32>
    tpu.vector_store %arg4[%c0_51, %c0_52], %111 {strides = array<i32>} : memref<1x32xf32, #tpu.memory_space<vmem>>, vector<1x32xf32>,
    %cst_53 = arith.constant dense<0.000000e+00> : vector<1x256xf32>
    %113 = tpu.matmul %111, %0, %cst_53 {dimension_numbers = #tpu.dot_dimension_numbers<[1], [0], [0], [1], [0, 0, 1, 1], [], []>} : vector<1x32xf32>, vector<32x256xf32>, vector<1x256xf32> -> vector<1x256xf32>
    %114 = arith.addf %113, %1 : vector<1x256xf32>
    %115 = arith.subf %114, %3 : vector<1x256xf32>
    %116 = arith.mulf %115, %115 : vector<1x256xf32>
    %117 = vector.shape_cast %116 : vector<1x256xf32> to vector<1x1x256xf32>
    %cst_54 = arith.constant dense<0.000000e+00> : vector<1xf32>
    %118 = vector.multi_reduction <add>, %117, %cst_54 [1, 2] : vector<1x1x256xf32> to vector<1xf32>
    %119 = vector.shape_cast %118 : vector<1xf32> to vector<1x1x1xf32>
    %120 = vector.extract %119[0, 0, 0] : f32 from vector<1x1x1xf32>
    %121 = vector.broadcast %120 : f32 to vector<1x1xf32>
    %cst_55 = arith.constant 2.560000e+02 : f32
    %122 = vector.broadcast %cst_55 : f32 to vector<1x1xf32>
    %123 = arith.divf %121, %122 : vector<1x1xf32>
    %c0_56 = arith.constant 0 : index
    %c0_57 = arith.constant 0 : index
    %124 = vector.load %arg5[%c0_56, %c0_57] : memref<1x1xf32, #tpu.memory_space<vmem>>, vector<1x1xf32>
    tpu.vector_store %arg5[%c0_56, %c0_57], %123 {strides = array<i32>} : memref<1x1xf32, #tpu.memory_space<vmem>>, vector<1x1xf32>,
    %c0_58 = arith.constant 0 : index
    %c0_59 = arith.constant 0 : index
    %125 = vector.load %arg6[%c0_58, %c0_59] : memref<32x32xf32, #tpu.memory_space<vmem>>, vector<32x32xf32>
    tpu.vector_store %arg6[%c0_58, %c0_59], %6 {strides = array<i32>} : memref<32x32xf32, #tpu.memory_space<vmem>>, vector<32x32xf32>,
    return
  }
}

</mosaic_0001>

<bundles_post_ra>
// kernel: tpu_custom_call.1
= control target key start
LH: loop header
LB: loop body
LE: loop exit
PB: predicated region body
PF: predicated region fallthrough
CT: control target
= control target key end

     0   :  { %12 = vsyncpa [#allocation3], 0  ;;  %s2732_s0 = inlined_call_operand.hbm [shape: f32[32,256], index: 0, kind: input, shape index: {}]   ;;  %s2733_s1 = inlined_call_operand.hbm [shape: f32[1,256], index: 1, kind: input, shape index: {}]   ;;  %s2734_s2 = inlined_call_operand.vmem [shape: f32[1,256], index: 2, kind: input, shape index: {}]   ;;  %s2735_s3 = inlined_call_operand.vmem [shape: f32[1,256], index: 3, kind: input, shape index: {}]   ;;  %s2736_s4 = inlined_call_operand.hbm [shape: f32[1,32], index: 4, kind: output, shape index: {0}]   ;;  %s2737_s5 = inlined_call_operand.hbm [shape: f32[1,1], index: 5, kind: output, shape index: {1}]   ;;  %s2738_s6 = inlined_call_operand.hbm [shape: f32[32,32], index: 6, kind: output, shape index: {2}]  }
   0x1   :  { %13 = vsyncpa [#allocation6], 0 }
   0x2   :  { %14 = vsyncpa [#allocation4], 0 }
   0x3   :  { %15 = vsyncpa [#allocation9], 0  ;;  %s2342_s21 = smov [#allocation2]  }
   0x4   :  { %s21_s22 = sshll.u32 %s2342_s21, 4  ;;  %s22_s22 = int_to_ptr.vmem [resolvable:$true] %s21_s22 }
   0x5   :  { %s2242_s23 = scalar_lea.vmem %s22_s22, 1024  ;;  %p2247_p1 = scmp.lt.s32.totalorder %s22_s22, %s22_s22 }
   0x6   :  { %p2243_p0 = scmp.ne.s32.totalorder %s22_s22, %s2242_s23  ;;  %p2248_p2 = scmp.lt.s32.totalorder %s2242_s23, %s2242_s23 }
   0x8   :  { %p2249_p3 = por %p2248_p2, %p2247_p1 }
   0xa   :  { %p2250_p4 = pnand %p2249_p3, %p2243_p0 }
   0xc   :  { %2253 = shalt.err (!%p2250_p4)
}
   0xd   :  { %s2343_s24 = smov 256   ;;  %s2344_s25 = smov 16  }
   0xe   :  { %27 = dma.hbm_to_vmem [thread:$0]  %s2732_s0, 1024, %s22_s22, [#allocation3], %s2343_s24, %s2343_s24, %s2344_s25  }
   0xf   :  { %s2345_s28 = smov [#allocation5]  }
  0x10   :  { %s34_s29 = sshll.u32 %s2345_s28, 4  ;;  %s35_s29 = int_to_ptr.vmem [resolvable:$true] %s34_s29 }
  0x11   :  { %s2262_s30 = scalar_lea.vmem %s35_s29, 32  ;;  %p2267_p6 = scmp.lt.s32.totalorder %s35_s29, %s35_s29 }
  0x12   :  { %p2263_p5 = scmp.ne.s32.totalorder %s35_s29, %s2262_s30  ;;  %p2268_p7 = scmp.lt.s32.totalorder %s2262_s30, %s2262_s30 }
  0x14   :  { %p2269_p8 = por %p2268_p7, %p2267_p6 }
  0x16   :  { %p2270_p9 = pnand %p2269_p8, %p2263_p5 }
  0x18   :  { %2273 = shalt.err (!%p2270_p9)
}
  0x19   :  { %37 = dma.hbm_to_vmem [thread:$0]  %s2733_s1, 32, %s35_s29, [#allocation6]  }
  0x1a   :  { %2334 = dma.done.wait [#allocation3], 1024  }
  0x1b   :  { %2335 = vsyncadd [#allocation3], 4294966272 }
  0x1c   :  { %2336 = dma.done.wait [#allocation6], 32  }
  0x1d   :  { %2337 = vsyncadd [#allocation6], 4294967264  ;;  %v2394_v0 = vld [vmem:[#allocation2 + $0x38] sm:$0xff]  ;;  %v2396_v1 = vld [vmem:[#allocation2 + $0x30] sm:$0xff]  ;;  %v150_v8 = vlaneseq  ;;  %v2346_v17 = vmov 0.0   ;;  %vm2347_vm0 = vmmov 0  }
  0x1e   :  { %v2398_v2 = vld [vmem:[#allocation2 + $0x28] sm:$0xff]  ;;  %83 = vmatprep.subr.mxu0 %v2394_v0  ;;  %184 = vmatprep.subr.mxu1 %v2394_v0  ;;  %v2407_v4 = vld [vmem:[#allocation2 + $0x20] sm:$0xff]  ;;  %v2410_v5 = vld [vmem:[#allocation2 + $0x18] sm:$0xff]  ;;  %vm231_vm1 = vcmask 261120   ;;  %vm1712_vm2 = vcmask 253952   ;;  %vm1814_vm3 = vcmask 1040384  }
  0x1f   :  { %84 = vmatpush1.xpose.msra.mxu0 %v2396_v1  ;;  %v2403_v3 = vld [vmem:[#allocation2 + $0x8] sm:$0xff]  ;;  %185 = vmatpush1.xpose.msra.mxu1 %v2396_v1  ;;  %v2416_v6 = vld [vmem:[#allocation2 + $0x10] sm:$0xff]  ;;  %v2422_v7 = vld [vmem:[#allocation2] sm:$0xff]  ;;  %v151_v9 = vshrl.u32 %v150_v8, 7 }
  0x20   :  { %85 = vmatprep.subr.mxu0 %v2398_v2  ;;  %123 = vmatprep.mubr.f32.mxu0 %v2403_v3  ;;  %v2434_v10 = vld [vmem:[#allocation5] sm:$0x3] }
  0x21   :  { %186 = vmatprep.subr.mxu1 %v2398_v2  ;;  %v57_v11 = vld [vmem:[%s2734_s2] sm:$0x3]  ;;  %v2440_v13 = vsub.s32 1, %v151_v9  ;;  %v2442_v14 = vsub.s32 0, %v151_v9 }
  0x22   :  { %v148_v12 = vsub.f32 %v2434_v10, %v57_v11 }
  0x23   :  { %86 = vmatpush1.xpose.msra.mxu0 %v2407_v4  ;;  %187 = vmatpush1.xpose.msra.mxu1 %v2407_v4 }
  0x24   :  { %87 = vmatprep.subr.mxu0 %v2410_v5  ;;  %188 = vmatprep.subr.mxu1 %v2410_v5  ;;  %v157_v15 = vrot.slane %v148_v12, %v2440_v13  ;;  %v153_v16 = vrot.slane %v148_v12, %v2442_v14 }
  0x26   :  { %224 = vmatprep.mubr.f32.mxu1 %v157_v15 }
  0x27   :  { %88 = vmatpush1.xpose.msra.mxu0 %v2416_v6  ;;  %189 = vmatpush1.xpose.msra.mxu1 %v2416_v6 }
  0x28   :  { %89 = vmatprep.subr.mxu0 %v2403_v3  ;;  %190 = vmatprep.subr.mxu1 %v2403_v3 }
  0x2b   :  { %90 = vmatpush1.xpose.msra.mxu0 %v2422_v7  ;;  %191 = vmatpush1.xpose.msra.mxu1 %v2422_v7 }
  0x2c   :  { %2001 = vmatprep.subr.mxu1 %v2346_v17  ;;  %2012 = vmatprep.subr.mxu0 %v2346_v17 }
  0x2e   :  { %124 = vmatmul.mubr.f32.vlgmr.msra.gmra.mxu0 %v2422_v7  ;;  %225 = vmatmul.mubr.f32.vlgmr.msra.gmra.mxu1 %v153_v16 }
  0x2f   :  { %128 = vmatprep.mubr.f32.mxu0 %v2410_v5  ;;  %2009 = vmatprep.mubr.msk.f32.mxu1 %vm2347_vm0, %v2346_v17 }
  0x32   :  { %129 = vmatmul.mubr.f32.gmra.mxu0 %v2416_v6 }
  0x33   :  { %133 = vmatprep.mubr.f32.mxu0 %v2398_v2 }
  0x36   :  { %134 = vmatmul.mubr.f32.gmra.mxu0 %v2407_v4 }
  0x37   :  { %138 = vmatprep.mubr.f32.mxu0 %v2394_v0 }
  0x3a   :  { %139 = vmatmul.mubr.f32.gmra.mxu0 %v2396_v1 }
  0x3b   :  { %2020 = vmatprep.mubr.msk.f32.mxu0 %vm2347_vm0, %v2346_v17 }
  0xee   :  { %v125_v18 = vpop.f32.mrf.mxu0  ;;  %v226_v30 = vpop.f32.mrf.mxu1 }
  0xef   :  { %v2452_v19 = vmul.f32 0.0078125, %v125_v18  ;;  %v2495_v32 = vmul.f32 0.0078125, %v226_v30 }
  0xf0   :  { %v127_v20 = vpop.f32.mrf.mxu0  ;;  %v228_v31 = vpop.f32.mrf.mxu1 }
  0xf1   :  { %1832 = vst.msk [vmem:[#allocation10] sm:$0xff] %vm231_vm1, %v2452_v19 }
  0xf2   :  { %v130_v21 = vpop.f32.mrf.mxu0 }
  0xf3   :  { %v2456_v22 = vmul.f32 0.0078125, %v130_v21 }
  0xf4   :  { %v132_v23 = vpop.f32.mrf.mxu0 }
  0xf5   :  { %1833 = vst.msk [vmem:[#allocation10 + $0x8] sm:$0xff] %vm231_vm1, %v2456_v22 }
  0xf6   :  { %v135_v24 = vpop.f32.mrf.mxu0 }
  0xf7   :  { %v2460_v25 = vmul.f32 0.0078125, %v135_v24 }
  0xf8   :  { %v137_v26 = vpop.f32.mrf.mxu0 }
  0xf9   :  { %1834 = vst.msk [vmem:[#allocation10 + $0x10] sm:$0xff] %vm231_vm1, %v2460_v25 }
  0xfa   :  { %v140_v27 = vpop.f32.mrf.mxu0 }
  0xfb   :  { %v2464_v28 = vmul.f32 0.0078125, %v140_v27 }
  0xfc   :  { %v142_v29 = vpop.f32.mrf.mxu0 }
  0xfd   :  { %2002 = vmatpush3.msra.mxu1 %v2464_v28  ;;  %2013 = vmatpush3.msra.mxu0 %v2464_v28  ;;  %1835 = vst.msk [vmem:[#allocation10 + $0x18] sm:$0xff] %vm231_vm1, %v2464_v28 }
  0xfe   :  { %2003 = vmatprep.subr.mxu1 %v2346_v17  ;;  %2014 = vmatprep.subr.mxu0 %v2346_v17 }
  0xff   :  { %2004 = vmatpush3.msra.mxu1 %v2460_v25  ;;  %2015 = vmatpush3.msra.mxu0 %v2460_v25 }
 0x100   :  { %2005 = vmatprep.subr.mxu1 %v2346_v17  ;;  %2016 = vmatprep.subr.mxu0 %v2346_v17 }
 0x101   :  { %2006 = vmatpush3.msra.mxu1 %v2456_v22  ;;  %2017 = vmatpush3.msra.mxu0 %v2456_v22 }
 0x102   :  { %2007 = vmatprep.subr.mxu1 %v2346_v17  ;;  %2018 = vmatprep.subr.mxu0 %v2346_v17 }
 0x103   :  { %2008 = vmatpush3.msra.mxu1 %v2452_v19  ;;  %2019 = vmatpush3.msra.mxu0 %v2452_v19 }
 0x104   :  { %2010 = vmatmul.mubr.f32.vlgmr.msra.gmra.mxu1 %v2346_v17  ;;  %2023 = vmatprep.subr.mxu1 %v2346_v17 }
 0x105   :  { %2024 = vmatpush3.msra.mxu1 %v2464_v28  ;;  %2034 = vmatprep.subr.mxu0 %v2346_v17 }
 0x106   :  { %2025 = vmatprep.subr.mxu1 %v2346_v17  ;;  %2031 = vmatprep.mubr.msk.f32.mxu1 %vm2347_vm0, %v2346_v17 }
 0x107   :  { %2026 = vmatpush3.msra.mxu1 %v2460_v25 }
 0x108   :  { %2027 = vmatprep.subr.mxu1 %v2346_v17 }
 0x109   :  { %2028 = vmatpush3.msra.mxu1 %v2456_v22 }
 0x10a   :  { %2029 = vmatprep.subr.mxu1 %v2346_v17 }
 0x10b   :  { %2030 = vmatpush3.msra.mxu1 %v2452_v19 }
 0x10c   :  { %2045 = vmatprep.subr.mxu1 %v2346_v17 }
 0x1c4   :  { %v301_v33 = vpop.f32.mrf.mxu1 }
 0x1c5   :  { %v302_v34 = vadd.f32 %v301_v33, %v2495_v32 }
 0x1c6   :  { %v2011_v35 = vpop.f32.mrf.mxu1 }
 0x1c7   :  { %v305_v36 = vsub.f32 0.0, %v302_v34 }
 0x1c9   :  { %2021 = vmatmul.mubr.msk.f32.vlgmr.msra.gmra.mxu0 %vm231_vm1, %v305_v36 }
 0x1ca   :  { %2035 = vmatpush3.msra.mxu0 %v2464_v28  ;;  %2042 = vmatprep.mubr.msk.f32.mxu0 %vm2347_vm0, %v2346_v17 }
 0x1cb   :  { %2036 = vmatprep.subr.mxu0 %v2346_v17 }
 0x1cc   :  { %2037 = vmatpush3.msra.mxu0 %v2460_v25 }
 0x1cd   :  { %2038 = vmatprep.subr.mxu0 %v2346_v17 }
 0x1ce   :  { %2039 = vmatpush3.msra.mxu0 %v2456_v22 }
 0x1cf   :  { %2040 = vmatprep.subr.mxu0 %v2346_v17 }
 0x1d0   :  { %2041 = vmatpush3.msra.mxu0 %v2452_v19 }
 0x1d1   :  { %2056 = vmatprep.subr.mxu0 %v2346_v17 }
 0x289   :  { %v375_v37 = vpop.f32.mrf.mxu0 }
 0x28a   :  { %v376_v38 = vadd.f32 %v375_v37, %v2495_v32 }
 0x28b   :  { %v2022_v39 = vpop.f32.mrf.mxu0 }
 0x28c   :  { %v379_v40 = vsub.f32 %v305_v36, %v376_v38 }
 0x28e   :  { %2032 = vmatmul.mubr.msk.f32.vlgmr.msra.gmra.mxu1 %vm231_vm1, %v379_v40 }
 0x28f   :  { %2046 = vmatpush3.msra.mxu1 %v2464_v28  ;;  %2053 = vmatprep.mubr.msk.f32.mxu1 %vm2347_vm0, %v2346_v17 }
 0x290   :  { %2047 = vmatprep.subr.mxu1 %v2346_v17 }
 0x291   :  { %2048 = vmatpush3.msra.mxu1 %v2460_v25 }
 0x292   :  { %2049 = vmatprep.subr.mxu1 %v2346_v17 }
 0x293   :  { %2050 = vmatpush3.msra.mxu1 %v2456_v22 }
 0x294   :  { %2051 = vmatprep.subr.mxu1 %v2346_v17 }
 0x295   :  { %2052 = vmatpush3.msra.mxu1 %v2452_v19 }
 0x296   :  { %2067 = vmatprep.subr.mxu1 %v2346_v17 }
 0x34e   :  { %v449_v41 = vpop.f32.mrf.mxu1 }
 0x34f   :  { %v450_v42 = vadd.f32 %v449_v41, %v2495_v32 }
 0x350   :  { %v2033_v43 = vpop.f32.mrf.mxu1 }
 0x351   :  { %v453_v44 = vsub.f32 %v379_v40, %v450_v42 }
 0x353   :  { %2043 = vmatmul.mubr.msk.f32.vlgmr.msra.gmra.mxu0 %vm231_vm1, %v453_v44 }
 0x354   :  { %2057 = vmatpush3.msra.mxu0 %v2464_v28  ;;  %2064 = vmatprep.mubr.msk.f32.mxu0 %vm2347_vm0, %v2346_v17 }
 0x355   :  { %2058 = vmatprep.subr.mxu0 %v2346_v17 }
 0x356   :  { %2059 = vmatpush3.msra.mxu0 %v2460_v25 }
 0x357   :  { %2060 = vmatprep.subr.mxu0 %v2346_v17 }
 0x358   :  { %2061 = vmatpush3.msra.mxu0 %v2456_v22 }
 0x359   :  { %2062 = vmatprep.subr.mxu0 %v2346_v17 }
 0x35a   :  { %2063 = vmatpush3.msra.mxu0 %v2452_v19 }
 0x35b   :  { %2078 = vmatprep.subr.mxu0 %v2346_v17 }
 0x413   :  { %v523_v45 = vpop.f32.mrf.mxu0 }
 0x414   :  { %v524_v46 = vadd.f32 %v523_v45, %v2495_v32 }
 0x415   :  { %v2044_v47 = vpop.f32.mrf.mxu0 }
 0x416   :  { %v527_v48 = vsub.f32 %v453_v44, %v524_v46 }
 0x418   :  { %2054 = vmatmul.mubr.msk.f32.vlgmr.msra.gmra.mxu1 %vm231_vm1, %v527_v48 }
 0x419   :  { %2068 = vmatpush3.msra.mxu1 %v2464_v28  ;;  %2075 = vmatprep.mubr.msk.f32.mxu1 %vm2347_vm0, %v2346_v17 }
 0x41a   :  { %2069 = vmatprep.subr.mxu1 %v2346_v17 }
 0x41b   :  { %2070 = vmatpush3.msra.mxu1 %v2460_v25 }
 0x41c   :  { %2071 = vmatprep.subr.mxu1 %v2346_v17 }
 0x41d   :  { %2072 = vmatpush3.msra.mxu1 %v2456_v22 }
 0x41e   :  { %2073 = vmatprep.subr.mxu1 %v2346_v17 }
 0x41f   :  { %2074 = vmatpush3.msra.mxu1 %v2452_v19 }
 0x420   :  { %2089 = vmatprep.subr.mxu1 %v2346_v17 }
 0x4d8   :  { %v597_v49 = vpop.f32.mrf.mxu1 }
 0x4d9   :  { %v598_v50 = vadd.f32 %v597_v49, %v2495_v32 }
 0x4da   :  { %v2055_v51 = vpop.f32.mrf.mxu1 }
 0x4db   :  { %v601_v52 = vsub.f32 %v527_v48, %v598_v50 }
 0x4dd   :  { %2065 = vmatmul.mubr.msk.f32.vlgmr.msra.gmra.mxu0 %vm231_vm1, %v601_v52 }
 0x4de   :  { %2079 = vmatpush3.msra.mxu0 %v2464_v28  ;;  %2086 = vmatprep.mubr.msk.f32.mxu0 %vm2347_vm0, %v2346_v17 }
 0x4df   :  { %2080 = vmatprep.subr.mxu0 %v2346_v17 }
 0x4e0   :  { %2081 = vmatpush3.msra.mxu0 %v2460_v25 }
 0x4e1   :  { %2082 = vmatprep.subr.mxu0 %v2346_v17 }
 0x4e2   :  { %2083 = vmatpush3.msra.mxu0 %v2456_v22 }
 0x4e3   :  { %2084 = vmatprep.subr.mxu0 %v2346_v17 }
 0x4e4   :  { %2085 = vmatpush3.msra.mxu0 %v2452_v19 }
 0x4e5   :  { %2100 = vmatprep.subr.mxu0 %v2346_v17 }
 0x59d   :  { %v671_v53 = vpop.f32.mrf.mxu0 }
 0x59e   :  { %v672_v54 = vadd.f32 %v671_v53, %v2495_v32 }
 0x59f   :  { %v2066_v55 = vpop.f32.mrf.mxu0 }
 0x5a0   :  { %v675_v56 = vsub.f32 %v601_v52, %v672_v54 }
 0x5a2   :  { %2076 = vmatmul.mubr.msk.f32.vlgmr.msra.gmra.mxu1 %vm231_vm1, %v675_v56 }
 0x5a3   :  { %2090 = vmatpush3.msra.mxu1 %v2464_v28  ;;  %2097 = vmatprep.mubr.msk.f32.mxu1 %vm2347_vm0, %v2346_v17 }
 0x5a4   :  { %2091 = vmatprep.subr.mxu1 %v2346_v17 }
 0x5a5   :  { %2092 = vmatpush3.msra.mxu1 %v2460_v25 }
 0x5a6   :  { %2093 = vmatprep.subr.mxu1 %v2346_v17 }
 0x5a7   :  { %2094 = vmatpush3.msra.mxu1 %v2456_v22 }
 0x5a8   :  { %2095 = vmatprep.subr.mxu1 %v2346_v17 }
 0x5a9   :  { %2096 = vmatpush3.msra.mxu1 %v2452_v19 }
 0x5aa   :  { %2111 = vmatprep.subr.mxu1 %v2346_v17 }
 0x662   :  { %v745_v57 = vpop.f32.mrf.mxu1 }
 0x663   :  { %v746_v58 = vadd.f32 %v745_v57, %v2495_v32 }
 0x664   :  { %v2077_v59 = vpop.f32.mrf.mxu1 }
 0x665   :  { %v749_v60 = vsub.f32 %v675_v56, %v746_v58 }
 0x667   :  { %2087 = vmatmul.mubr.msk.f32.vlgmr.msra.gmra.mxu0 %vm231_vm1, %v749_v60 }
 0x668   :  { %2101 = vmatpush3.msra.mxu0 %v2464_v28  ;;  %2108 = vmatprep.mubr.msk.f32.mxu0 %vm2347_vm0, %v2346_v17 }
 0x669   :  { %2102 = vmatprep.subr.mxu0 %v2346_v17 }
 0x66a   :  { %2103 = vmatpush3.msra.mxu0 %v2460_v25 }
 0x66b   :  { %2104 = vmatprep.subr.mxu0 %v2346_v17 }
 0x66c   :  { %2105 = vmatpush3.msra.mxu0 %v2456_v22 }
 0x66d   :  { %2106 = vmatprep.subr.mxu0 %v2346_v17 }
 0x66e   :  { %2107 = vmatpush3.msra.mxu0 %v2452_v19 }
 0x66f   :  { %2122 = vmatprep.subr.mxu0 %v2346_v17 }
 0x727   :  { %v819_v61 = vpop.f32.mrf.mxu0 }
 0x728   :  { %v820_v62 = vadd.f32 %v819_v61, %v2495_v32 }
 0x729   :  { %v2088_v63 = vpop.f32.mrf.mxu0 }
 0x72a   :  { %v823_v8 = vsub.f32 %v749_v60, %v820_v62 }
 0x72c   :  { %2098 = vmatmul.mubr.msk.f32.vlgmr.msra.gmra.mxu1 %vm231_vm1, %v823_v8 }
 0x72d   :  { %2112 = vmatpush3.msra.mxu1 %v2464_v28  ;;  %2119 = vmatprep.mubr.msk.f32.mxu1 %vm2347_vm0, %v2346_v17 }
 0x72e   :  { %2113 = vmatprep.subr.mxu1 %v2346_v17 }
 0x72f   :  { %2114 = vmatpush3.msra.mxu1 %v2460_v25 }
 0x730   :  { %2115 = vmatprep.subr.mxu1 %v2346_v17 }
 0x731   :  { %2116 = vmatpush3.msra.mxu1 %v2456_v22 }
 0x732   :  { %2117 = vmatprep.subr.mxu1 %v2346_v17 }
 0x733   :  { %2118 = vmatpush3.msra.mxu1 %v2452_v19 }
 0x734   :  { %2133 = vmatprep.subr.mxu1 %v2346_v17 }
 0x7ec   :  { %v893_v9 = vpop.f32.mrf.mxu1 }
 0x7ed   :  { %v894_v11 = vadd.f32 %v893_v9, %v2495_v32 }
 0x7ee   :  { %v2099_v12 = vpop.f32.mrf.mxu1 }
 0x7ef   :  { %v897_v15 = vsub.f32 %v823_v8, %v894_v11 }
 0x7f1   :  { %2109 = vmatmul.mubr.msk.f32.vlgmr.msra.gmra.mxu0 %vm231_vm1, %v897_v15 }
 0x7f2   :  { %2123 = vmatpush3.msra.mxu0 %v2464_v28  ;;  %2130 = vmatprep.mubr.msk.f32.mxu0 %vm2347_vm0, %v2346_v17 }
 0x7f3   :  { %2124 = vmatprep.subr.mxu0 %v2346_v17 }
 0x7f4   :  { %2125 = vmatpush3.msra.mxu0 %v2460_v25 }
 0x7f5   :  { %2126 = vmatprep.subr.mxu0 %v2346_v17 }
 0x7f6   :  { %2127 = vmatpush3.msra.mxu0 %v2456_v22 }
 0x7f7   :  { %2128 = vmatprep.subr.mxu0 %v2346_v17 }
 0x7f8   :  { %2129 = vmatpush3.msra.mxu0 %v2452_v19 }
 0x7f9   :  { %2144 = vmatprep.subr.mxu0 %v2346_v17 }
 0x8b1   :  { %v967_v16 = vpop.f32.mrf.mxu0 }
 0x8b2   :  { %v968_v18 = vadd.f32 %v967_v16, %v2495_v32 }
 0x8b3   :  { %v2110_v20 = vpop.f32.mrf.mxu0 }
 0x8b4   :  { %v971_v21 = vsub.f32 %v897_v15, %v968_v18 }
 0x8b6   :  { %2120 = vmatmul.mubr.msk.f32.vlgmr.msra.gmra.mxu1 %vm231_vm1, %v971_v21 }
 0x8b7   :  { %2134 = vmatpush3.msra.mxu1 %v2464_v28  ;;  %2141 = vmatprep.mubr.msk.f32.mxu1 %vm2347_vm0, %v2346_v17 }
 0x8b8   :  { %2135 = vmatprep.subr.mxu1 %v2346_v17 }
 0x8b9   :  { %2136 = vmatpush3.msra.mxu1 %v2460_v25 }
 0x8ba   :  { %2137 = vmatprep.subr.mxu1 %v2346_v17 }
 0x8bb   :  { %2138 = vmatpush3.msra.mxu1 %v2456_v22 }
 0x8bc   :  { %2139 = vmatprep.subr.mxu1 %v2346_v17 }
 0x8bd   :  { %2140 = vmatpush3.msra.mxu1 %v2452_v19 }
 0x8be   :  { %2155 = vmatprep.subr.mxu1 %v2346_v17 }
 0x976   :  { %v1041_v23 = vpop.f32.mrf.mxu1 }
 0x977   :  { %v1042_v24 = vadd.f32 %v1041_v23, %v2495_v32 }
 0x978   :  { %v2121_v26 = vpop.f32.mrf.mxu1 }
 0x979   :  { %v1045_v27 = vsub.f32 %v971_v21, %v1042_v24 }
 0x97b   :  { %2131 = vmatmul.mubr.msk.f32.vlgmr.msra.gmra.mxu0 %vm231_vm1, %v1045_v27 }
 0x97c   :  { %2145 = vmatpush3.msra.mxu0 %v2464_v28  ;;  %2152 = vmatprep.mubr.msk.f32.mxu0 %vm2347_vm0, %v2346_v17 }
 0x97d   :  { %2146 = vmatprep.subr.mxu0 %v2346_v17 }
 0x97e   :  { %2147 = vmatpush3.msra.mxu0 %v2460_v25 }
 0x97f   :  { %2148 = vmatprep.subr.mxu0 %v2346_v17 }
 0x980   :  { %2149 = vmatpush3.msra.mxu0 %v2456_v22 }
 0x981   :  { %2150 = vmatprep.subr.mxu0 %v2346_v17 }
 0x982   :  { %2151 = vmatpush3.msra.mxu0 %v2452_v19 }
 0x983   :  { %2166 = vmatprep.subr.mxu0 %v2346_v17 }
 0xa3b   :  { %v1115_v29 = vpop.f32.mrf.mxu0 }
 0xa3c   :  { %v1116_v30 = vadd.f32 %v1115_v29, %v2495_v32 }
 0xa3d   :  { %v2132_v31 = vpop.f32.mrf.mxu0 }
 0xa3e   :  { %v1119_v33 = vsub.f32 %v1045_v27, %v1116_v30 }
 0xa40   :  { %2142 = vmatmul.mubr.msk.f32.vlgmr.msra.gmra.mxu1 %vm231_vm1, %v1119_v33 }
 0xa41   :  { %2156 = vmatpush3.msra.mxu1 %v2464_v28  ;;  %2163 = vmatprep.mubr.msk.f32.mxu1 %vm2347_vm0, %v2346_v17 }
 0xa42   :  { %2157 = vmatprep.subr.mxu1 %v2346_v17 }
 0xa43   :  { %2158 = vmatpush3.msra.mxu1 %v2460_v25 }
 0xa44   :  { %2159 = vmatprep.subr.mxu1 %v2346_v17 }
 0xa45   :  { %2160 = vmatpush3.msra.mxu1 %v2456_v22 }
 0xa46   :  { %2161 = vmatprep.subr.mxu1 %v2346_v17 }
 0xa47   :  { %2162 = vmatpush3.msra.mxu1 %v2452_v19 }
 0xa48   :  { %2177 = vmatprep.subr.mxu1 %v2346_v17 }
 0xb00   :  { %v1189_v34 = vpop.f32.mrf.mxu1 }
 0xb01   :  { %v1190_v35 = vadd.f32 %v1189_v34, %v2495_v32 }
 0xb02   :  { %v2143_v36 = vpop.f32.mrf.mxu1 }
 0xb03   :  { %v1193_v37 = vsub.f32 %v1119_v33, %v1190_v35 }
 0xb05   :  { %2153 = vmatmul.mubr.msk.f32.vlgmr.msra.gmra.mxu0 %vm231_vm1, %v1193_v37 }
 0xb06   :  { %2167 = vmatpush3.msra.mxu0 %v2464_v28  ;;  %2174 = vmatprep.mubr.msk.f32.mxu0 %vm2347_vm0, %v2346_v17 }
 0xb07   :  { %2168 = vmatprep.subr.mxu0 %v2346_v17 }
 0xb08   :  { %2169 = vmatpush3.msra.mxu0 %v2460_v25 }
 0xb09   :  { %2170 = vmatprep.subr.mxu0 %v2346_v17 }
 0xb0a   :  { %2171 = vmatpush3.msra.mxu0 %v2456_v22 }
 0xb0b   :  { %2172 = vmatprep.subr.mxu0 %v2346_v17 }
 0xb0c   :  { %2173 = vmatpush3.msra.mxu0 %v2452_v19 }
 0xb0d   :  { %2188 = vmatprep.subr.mxu0 %v2346_v17 }
 0xbc5   :  { %v1263_v38 = vpop.f32.mrf.mxu0 }
 0xbc6   :  { %v1264_v39 = vadd.f32 %v1263_v38, %v2495_v32 }
 0xbc7   :  { %v2154_v40 = vpop.f32.mrf.mxu0 }
 0xbc8   :  { %v1267_v41 = vsub.f32 %v1193_v37, %v1264_v39 }
 0xbca   :  { %2164 = vmatmul.mubr.msk.f32.vlgmr.msra.gmra.mxu1 %vm231_vm1, %v1267_v41 }
 0xbcb   :  { %2178 = vmatpush3.msra.mxu1 %v2464_v28  ;;  %2185 = vmatprep.mubr.msk.f32.mxu1 %vm2347_vm0, %v2346_v17 }
 0xbcc   :  { %2179 = vmatprep.subr.mxu1 %v2346_v17 }
 0xbcd   :  { %2180 = vmatpush3.msra.mxu1 %v2460_v25 }
 0xbce   :  { %2181 = vmatprep.subr.mxu1 %v2346_v17 }
 0xbcf   :  { %2182 = vmatpush3.msra.mxu1 %v2456_v22 }
 0xbd0   :  { %2183 = vmatprep.subr.mxu1 %v2346_v17 }
 0xbd1   :  { %2184 = vmatpush3.msra.mxu1 %v2452_v19 }
 0xbd2   :  { %2199 = vmatprep.subr.mxu1 %v2346_v17 }
 0xc8a   :  { %v1337_v42 = vpop.f32.mrf.mxu1 }
 0xc8b   :  { %v1338_v43 = vadd.f32 %v1337_v42, %v2495_v32 }
 0xc8c   :  { %v2165_v44 = vpop.f32.mrf.mxu1 }
 0xc8d   :  { %v1341_v45 = vsub.f32 %v1267_v41, %v1338_v43 }
 0xc8f   :  { %2175 = vmatmul.mubr.msk.f32.vlgmr.msra.gmra.mxu0 %vm231_vm1, %v1341_v45 }
 0xc90   :  { %2189 = vmatpush3.msra.mxu0 %v2464_v28  ;;  %2196 = vmatprep.mubr.msk.f32.mxu0 %vm2347_vm0, %v2346_v17 }
 0xc91   :  { %2190 = vmatprep.subr.mxu0 %v2346_v17 }
 0xc92   :  { %2191 = vmatpush3.msra.mxu0 %v2460_v25 }
 0xc93   :  { %2192 = vmatprep.subr.mxu0 %v2346_v17 }
 0xc94   :  { %2193 = vmatpush3.msra.mxu0 %v2456_v22 }
 0xc95   :  { %2194 = vmatprep.subr.mxu0 %v2346_v17 }
 0xc96   :  { %2195 = vmatpush3.msra.mxu0 %v2452_v19 }
 0xc97   :  { %2210 = vmatprep.subr.mxu0 %v2346_v17 }
 0xd4f   :  { %v1411_v46 = vpop.f32.mrf.mxu0 }
 0xd50   :  { %v1412_v47 = vadd.f32 %v1411_v46, %v2495_v32 }
 0xd51   :  { %v2176_v48 = vpop.f32.mrf.mxu0 }
 0xd52   :  { %v1415_v49 = vsub.f32 %v1341_v45, %v1412_v47 }
 0xd54   :  { %2186 = vmatmul.mubr.msk.f32.vlgmr.msra.gmra.mxu1 %vm231_vm1, %v1415_v49 }
 0xd55   :  { %2200 = vmatpush3.msra.mxu1 %v2464_v28  ;;  %2207 = vmatprep.mubr.msk.f32.mxu1 %vm2347_vm0, %v2346_v17 }
 0xd56   :  { %2201 = vmatprep.subr.mxu1 %v2346_v17 }
 0xd57   :  { %2202 = vmatpush3.msra.mxu1 %v2460_v25 }
 0xd58   :  { %2203 = vmatprep.subr.mxu1 %v2346_v17 }
 0xd59   :  { %2204 = vmatpush3.msra.mxu1 %v2456_v22 }
 0xd5a   :  { %2205 = vmatprep.subr.mxu1 %v2346_v17 }
 0xd5b   :  { %2206 = vmatpush3.msra.mxu1 %v2452_v19 }
 0xd5c   :  { %1752 = vmatprep.subr.mxu1 %v2394_v0 }
 0xe14   :  { %v1485_v50 = vpop.f32.mrf.mxu1 }
 0xe15   :  { %v1486_v51 = vadd.f32 %v1485_v50, %v2495_v32 }
 0xe16   :  { %v2187_v52 = vpop.f32.mrf.mxu1 }
 0xe17   :  { %v1489_v53 = vsub.f32 %v1415_v49, %v1486_v51 }
 0xe19   :  { %2197 = vmatmul.mubr.msk.f32.vlgmr.msra.gmra.mxu0 %vm231_vm1, %v1489_v53 }
 0xe1a   :  { %2211 = vmatpush3.msra.mxu0 %v2464_v28  ;;  %2218 = vmatprep.mubr.msk.f32.mxu0 %vm2347_vm0, %v2346_v17 }
 0xe1b   :  { %2212 = vmatprep.subr.mxu0 %v2346_v17 }
 0xe1c   :  { %2213 = vmatpush3.msra.mxu0 %v2460_v25 }
 0xe1d   :  { %2214 = vmatprep.subr.mxu0 %v2346_v17 }
 0xe1e   :  { %2215 = vmatpush3.msra.mxu0 %v2456_v22 }
 0xe1f   :  { %2216 = vmatprep.subr.mxu0 %v2346_v17 }
 0xe20   :  { %2217 = vmatpush3.msra.mxu0 %v2452_v19 }
 0xed9   :  { %v1559_v0 = vpop.f32.mrf.mxu0 }
 0xeda   :  { %v1560_v54 = vadd.f32 %v1559_v0, %v2495_v32 }
 0xedb   :  { %v2198_v55 = vpop.f32.mrf.mxu0 }
 0xedc   :  { %v1563_v28 = vsub.f32 %v1489_v53, %v1560_v54 }
 0xede   :  { %2208 = vmatmul.mubr.msk.f32.vlgmr.msra.gmra.mxu1 %vm231_vm1, %v1563_v28 }
 0xedf   :  { %1753 = vmatpush1.msra.mxu1 %v2396_v1  ;;  %1792 = vmatprep.mubr.f32.mxu1 %v2346_v17 }
 0xee0   :  { %1754 = vmatprep.subr.mxu1 %v2398_v2 }
 0xee1   :  { %1755 = vmatpush1.msra.mxu1 %v2407_v4 }
 0xee2   :  { %1756 = vmatprep.subr.mxu1 %v2410_v5  ;;  %v1718_v5 = vrot.slane %v2434_v10, %v2442_v14 }
 0xee3   :  { %1757 = vmatpush1.msra.mxu1 %v2416_v6 }
 0xee4   :  { %1758 = vmatprep.subr.mxu1 %v2403_v3  ;;  %v58_v3 = vld [vmem:[%s2735_s3] sm:$0x3]  ;;  %s2348_s3 = smov [#allocation7]  }
 0xee5   :  { %1759 = vmatpush1.msra.mxu1 %v2422_v7  ;;  %v1803_v6 = vrot.slane %v58_v3, %v2442_v14  ;;  %v1722_v7 = vrot.slane %v2434_v10, %v2440_v13  ;;  %v1807_v58 = vrot.slane %v58_v3, %v2440_v13  ;;  %s1842_s10 = sshll.u32 %s2348_s3, 4  ;;  %s1843_s10 = int_to_ptr.vmem [resolvable:$true] %s1842_s10 }
 0xee6   :  { %s2274_s11 = scalar_lea.vmem %s1843_s10, 16  ;;  %s2278_s12 = scalar_lea.vmem %s1843_s10, 32 }
 0xee7   :  { %p2275_p10 = scmp.ne.s32.totalorder %s1843_s10, %s2274_s11  ;;  %p2279_p11 = scmp.lt.s32.totalorder %s1843_s10, %s1843_s10 }
 0xee8   :  { %p2280_p12 = scmp.lt.s32.totalorder %s2278_s12, %s2274_s11 }
 0xeea   :  { %p2281_p13 = por %p2280_p12, %p2279_p11 }
 0xeec   :  { %p2282_p0 = pnand %p2281_p13, %p2275_p10 }
 0xf9e   :  { %v1633_v19 = vpop.f32.mrf.mxu1 }
 0xf9f   :  { %v1634_v22 = vadd.f32 %v1633_v19, %v2495_v32 }
 0xfa0   :  { %v2209_v25 = vpop.f32.mrf.mxu1 }
 0xfa1   :  { %v1637_v56 = vsub.f32 %v1563_v28, %v1634_v22 }
 0xfa3   :  { %2219 = vmatmul.mubr.msk.f32.vlgmr.msra.gmra.mxu0 %vm231_vm1, %v1637_v56 }
0x1063   :  { %v1707_v1 = vpop.f32.mrf.mxu0 }
0x1064   :  { %v1708_v2 = vadd.f32 %v1707_v1, %v2495_v32 }
0x1065   :  { %v2220_v17 = vpop.f32.mrf.mxu0 }
0x1066   :  { %v1711_v4 = vsub.f32 %v1637_v56, %v1708_v2 }
0x1068   :  { %1900 = vmatmul.mubr.msk.f32.vlgmr.msra.gmra.mxu1 %vm231_vm1, %v1711_v4  ;;  %1713 = vst.msk [vmem:[#allocation7] sm:$0x1] %vm1712_vm2, %v1711_v4 }
0x1128   :  { %v1794_v57 = vpop.f32.mrf.mxu1 }
0x1129   :  { %v1795_v32 = vadd.f32 %v1794_v57, %v1718_v5 }
0x112a   :  { %v1796_v59 = vpop.f32.mrf.mxu1 }
0x112b   :  { %v1810_v60 = vsub.f32 %v1795_v32, %v1803_v6  ;;  %v1797_v61 = vadd.f32 %v1796_v59, %v1722_v7 }
0x112d   :  { %v1811_v62 = vsub.f32 %v1797_v61, %v1807_v58  ;;  %v1812_v63 = vmul.f32 %v1810_v60, %v1810_v60 }
0x112f   :  { %v1813_v8 = vmul.f32 %v1811_v62, %v1811_v62  ;;  %v1815_v9 = vsel %vm1814_vm3, %v1812_v63, 0.0 }
0x1131   :  { %v1816_v11 = vsel %vm1814_vm3, %v1813_v8, 0.0 }
0x1132   :  { %v1817_v12 = vadd.f32 %v1816_v11, %v1815_v9 }
0x1134   :  { %1818 = vadd.xlane.f32.xlu0 %v1817_v12 }
0x1135   :  { %2285 = shalt.err (!%p2282_p0)
}
0x1136   :  { %1845 = dma.vmem_to_hbm [thread:$0]  %s1843_s10, 16, %s2736_s4, [#allocation4]   ;;  %vm1830_vm4 = vcmask 0  }
0x1137   :  { %s2349_s15 = smov [#allocation8]   ;;  %s2350_s18 = smov [#allocation10]  }
0x1138   :  { %s1852_s16 = sshll.u32 %s2349_s15, 4  ;;  %s1861_s19 = sshll.u32 %s2350_s18, 4  ;;  %s1853_s16 = int_to_ptr.vmem [resolvable:$true] %s1852_s16  ;;  %s1862_s19 = int_to_ptr.vmem [resolvable:$true] %s1861_s19 }
0x1139   :  { %s2294_s4 = scalar_lea.vmem %s1853_s16, 16  ;;  %s2298_s20 = scalar_lea.vmem %s1853_s16, 32 }
0x113a   :  { %p2295_p1 = scmp.ne.s32.totalorder %s1853_s16, %s2294_s4  ;;  %p2299_p2 = scmp.lt.s32.totalorder %s1853_s16, %s1853_s16 }
0x113b   :  { %p2300_p3 = scmp.lt.s32.totalorder %s2298_s20, %s2294_s4 }
0x113d   :  { %p2301_p4 = por %p2300_p3, %p2299_p2 }
0x113f   :  { %p2302_p5 = pnand %p2301_p4, %p2295_p1 }
0x11bd   :  { %v1819_v10 = vpop.xlane.xlu0 %1818 }
0x11be   :  { %v1820_v13 = vrot.slane %v1819_v10, 4 }
0x11c0   :  { %v1821_v14 = vadd.f32 %v1820_v13, %v1819_v10 }
0x11c2   :  { %v1822_v15 = vrot.slane %v1821_v14, 2 }
0x11c4   :  { %v1823_v16 = vadd.f32 %v1822_v15, %v1821_v14 }
0x11c6   :  { %v1824_v18 = vrot.slane %v1823_v16, 1 }
0x11c8   :  { %v1825_v20 = vadd.f32 %v1824_v18, %v1823_v16 }
0x11ca   :  { %2221 = vpush %v1825_v20 }
0x11fb   :  { %s2222_s17 = spop %2221 }
0x11fc   :  { %v1827_v21 = vstv %s2222_s17 }
0x11fd   :  { %v1829_v23 = vmul.f32 0.00390625, %v1827_v21 }
0x11ff   :  { %1831 = vst.msk [vmem:[#allocation8] sm:$0x1] %vm1830_vm4, %v1829_v23 }
0x1200   :  { %2305 = shalt.err (!%p2302_p5)
}
0x1201   :  { %1855 = dma.vmem_to_hbm [thread:$0]  %s1853_s16, 16, %s2737_s5, [#allocation9]  }
0x1202   :  { %s2314_s23 = scalar_lea.vmem %s1862_s19, 512  ;;  %p2319_p7 = scmp.lt.s32.totalorder %s1862_s19, %s1862_s19 }
0x1203   :  { %p2315_p6 = scmp.ne.s32.totalorder %s1862_s19, %s2314_s23  ;;  %p2320_p8 = scmp.lt.s32.totalorder %s2314_s23, %s2314_s23 }
0x1205   :  { %p2321_p9 = por %p2320_p8, %p2319_p7 }
0x1207   :  { %p2322_p10 = pnand %p2321_p9, %p2315_p6 }
0x1209   :  { %2325 = shalt.err (!%p2322_p10)
}
0x120a   :  { %s2351_s24 = smov 128   ;;  %s2352_s25 = smov 8  }
0x120b   :  { %1867 = dma.vmem_to_hbm [thread:$0]  %s1862_s19, 512, %s2738_s6, [#allocation9], %s2351_s24, %s2351_s24, %s2352_s25  }
0x120c   :  { %2338 = dma.done.wait [#allocation4], 16  }
0x120d   :  { %2339 = vsyncadd [#allocation4], 4294967280 }
0x120e   :  { %2340 = dma.done.wait [#allocation9], 528  }
0x120f   :  { %2341 = vsyncadd [#allocation9], 4294966768 }
0x1210   :  { %1877 = vsyncpa [#allocation3], 1 }
0x1211   :  { %1878 = vsyncpa [#allocation6], 1 }
0x1212   :  { %1879 = vsyncpa [#allocation4], 1 }
0x1213   :  { %1880 = vsyncpa [#allocation9], 1 }

</bundles_post_ra>
